<compile_context>
chip_gen: v6e
topology: v6e:2x2x1
jax: 0.10.0
libtpu: 0.0.40
codegen_flags: <defaults>
</compile_context>

<pallas_src>
import functools
import math

import jax
import jax.numpy as jnp
import numpy as np
from jax import lax
from jax.experimental import pallas as pl
from jax.experimental.pallas import tpu as pltpu

_SUB = 8                               # packed rows per sub-block (one f32 sublane group)
_LANES = 128
_MAX_PACKED_ROW_BYTES = 256 * 1024     # cap on e_packed * 4 when choosing the packing
_TARGET_TILE_BYTES = 4 * 1024 * 1024   # per-output-buffer tile (double-buffered by Pallas)
_CHUNK_TARGET_BYTES = 256 * 1024       # in-kernel strip size (bounds vreg/VMEM temporaries)
_VMEM_LIMIT_BYTES = 32 * 1024 * 1024   # explicit: v5e scoped default is only 16 MiB


def _pos_enc_kernel(coef_ref, cb_ref, sb_ref, o_ref, *, pack: int, chunk: int):
    nb, sub, _ = o_ref.shape           # (sub-blocks per tile, 8, packed lane dim)

    # ---- per-tile seed: exact sin/cos of the first 8 packed rows of this tile ----
    inv = coef_ref[0:1, :]                                   # (1, EP)  base ** (-2i/d_model)
    phr = coef_ref[1:2, :]                                   # (1, EP)  phase + packed-pos offset
    row0 = pl.program_id(0) * (nb * sub)                     # first packed row of this tile
    r = lax.broadcasted_iota(jnp.int32, (sub, 1), 0).astype(jnp.float32)
    pos = (r + row0.astype(jnp.float32)) * jnp.float32(pack)  # absolute position base, (8, 1)
    theta = pos * inv + phr                                   # (8, EP)
    s0 = jnp.sin(theta)[None, :, :]                           # (1, 8, EP)
    c0 = jnp.sin(theta + jnp.float32(math.pi / 2.0))[None, :, :]   # cos via sin(x + pi/2)

    # ---- rotate the seed onto every sub-block of the tile: 2 mul + 1 add / element ----
    def emit(start, count):
        cb = cb_ref[pl.ds(start, count)]                      # (count, 1, EP) = cos(b*8*pack*inv)
        sb = sb_ref[pl.ds(start, count)]                      # (count, 1, EP) = sin(b*8*pack*inv)
        o_ref[pl.ds(start, count)] = s0 * cb + c0 * sb        # (count, 8, EP)

    n_full, rem = nb // chunk, nb % chunk
    if n_full == 1:
        emit(0, chunk)
    elif n_full > 1:
        def body(c, carry):
            emit(pl.multiple_of(c * chunk, chunk), chunk)
            return carry
        lax.fori_loop(0, n_full, body, 0)
    if rem:
        emit(n_full * chunk, rem)


def positional_encoding(seq_len: int, embedding_dim: int, d_model: int):
    """Pallas equivalent of Positional_Encoding(d_model)(seq_len, embedding_dim)."""
    # --- lane-dense packing: pack consecutive positions so the lane dim is k*128 ---
    pack = _LANES // math.gcd(embedding_dim, _LANES)
    if embedding_dim * pack * 4 > _MAX_PACKED_ROW_BYTES:
        pack = 1                         # huge embedding dim: accept a (rare) masked lane tail
    e_packed = embedding_dim * pack

    s_packed = -(-seq_len // pack)                      # packed rows needed
    total_blocks = -(-s_packed // _SUB)                 # 8-row sub-blocks needed

    # --- tile sizing ---
    block_bytes = _SUB * e_packed * 4
    nb_tile = max(1, _TARGET_TILE_BYTES // block_bytes)
    nb_tile = min(nb_tile, total_blocks)
    if total_blocks >= 2:                               # >=2 grid steps → both v7x TCs busy
        nb_tile = min(nb_tile, -(-total_blocks // 2))
    grid_n = -(-total_blocks // nb_tile)
    blocks_padded = grid_n * nb_tile                    # every tile full → unmasked stores
    chunk = max(1, min(nb_tile, _CHUNK_TARGET_BYTES // block_bytes))

    # --- host float64 precompute of all column-only / block-only factors ---
    j = np.arange(e_packed)
    i = j % embedding_dim
    pos_off = (j // embedding_dim).astype(np.float64)   # position offset within a packed row
    even = (i % 2) == 0
    base = np.where(even, 1000.0, 10000.0)              # reference: 1000 (sin) / 10000 (cos)
    inv = base ** (-(2.0 * i) / float(d_model))
    phase = np.where(even, 0.0, np.pi / 2.0)            # cos(x) == sin(x + pi/2)
    coef = np.stack([inv, pos_off * inv + phase]).astype(np.float32)     # (2, EP)

    b = np.arange(nb_tile, dtype=np.float64).reshape(nb_tile, 1, 1)
    delta = b * (float(_SUB) * pack) * inv.reshape(1, 1, e_packed)
    cb = np.cos(delta).astype(np.float32)               # (nb_tile, 1, EP)
    sb = np.sin(delta).astype(np.float32)               # (nb_tile, 1, EP)

    kernel = functools.partial(_pos_enc_kernel, pack=pack, chunk=chunk)
    packed = pl.pallas_call(
        kernel,
        out_shape=jax.ShapeDtypeStruct((blocks_padded, _SUB, e_packed), jnp.float32),
        grid=(grid_n,),
        in_specs=[
            pl.BlockSpec((2, e_packed), lambda s: (0, 0)),
            pl.BlockSpec((nb_tile, 1, e_packed), lambda s: (0, 0, 0)),
            pl.BlockSpec((nb_tile, 1, e_packed), lambda s: (0, 0, 0)),
        ],
        out_specs=pl.BlockSpec((nb_tile, _SUB, e_packed), lambda s: (s, 0, 0)),
        compiler_params=pltpu.CompilerParams(
            dimension_semantics=("parallel",),
            vmem_limit_bytes=_VMEM_LIMIT_BYTES),
    )(jnp.asarray(coef), jnp.asarray(cb), jnp.asarray(sb))

    # Free row-major reshape back to the logical table, then trim the padded rows.
    table = packed.reshape(blocks_padded * _SUB * pack, embedding_dim)
    return table[:seq_len]


def _reference(seq_len, embedding_dim, d_model):
    """Pure-python reference mirroring the PyTorch/numpy double loop (float64 math)."""
    pe = np.zeros((seq_len, embedding_dim), dtype=np.float64)
    for pos in range(seq_len):
        for i in range(embedding_dim):
            if i % 2 == 0:
                pe[pos, i] = math.sin(pos / 1000 ** (2 * i / d_model))
            else:
                pe[pos, i] = math.cos(pos / 10000 ** (2 * i / d_model))
    return pe.astype(np.float32)


if __name__ == "__main__":
    # (PRNGKey(0) created for protocol consistency; this module has no random
    #  parameters or tensor inputs — forward only takes seq_len / embedding_dim.)
    _ = jax.random.PRNGKey(0)

    cases = [
        (8,   32,  32),   # pack=4  → EP=128, single block, single grid step
        (16,  48,  48),   # pack=8  → EP=384 (gcd-based packing, non power-of-two E)
        (64,  256, 256),  # pack=1  → EP=256, 8 blocks, 2 grid steps (megacore path)
        (200, 40,  64),   # pack=16 → EP=640, padded rows trimmed, 2 grid steps
    ]
    for (seq_len, embedding_dim, d_model) in cases:
        out = jax.block_until_ready(positional_encoding(seq_len, embedding_dim, d_model))
        ref = _reference(seq_len, embedding_dim, d_model)
        # f32 kernel vs f64 reference: error grows with |pos| (f32 range reduction
        # inside sin); 1e-4 absolute is ample margin while still catching any
        # semantic bug (wrong base / parity / packing), since values are O(1).
        np.testing.assert_allclose(np.asarray(out), ref, rtol=1e-5, atol=1e-4)
    print("KERNEL_OK")
</pallas_src>

<mosaic_0001>
module attributes {stable_mosaic.version = 11 : i64} {
  func.func @_pos_enc_kernel(%arg0: i32, %arg1: memref<2x128xf32, #tpu.memory_space<vmem>>, %arg2: memref<1x1x128xf32, #tpu.memory_space<vmem>>, %arg3: memref<1x1x128xf32, #tpu.memory_space<vmem>>, %arg4: memref<1x8x128xf32, #tpu.memory_space<vmem>>) attributes {dimension_semantics = [#tpu.dimension_semantics<parallel>], iteration_bounds = array<i64: 1>, scalar_prefetch = 0 : i64, scratch_operands = 0 : i64, tpu.core_type = #tpu.core_type<tc>, window_params = [{pipeline_mode = #tpu.pipeline_mode<synchronous>, transform_indices = @transform_0, window_bounds = array<i64: 2, 128>}, {pipeline_mode = #tpu.pipeline_mode<synchronous>, transform_indices = @transform_1, window_bounds = array<i64: 1, 1, 128>}, {pipeline_mode = #tpu.pipeline_mode<synchronous>, transform_indices = @transform_2, window_bounds = array<i64: 1, 1, 128>}, {transform_indices = @transform_3, window_bounds = array<i64: 1, 8, 128>}]} {
    %c0 = arith.constant 0 : index
    %c0_0 = arith.constant 0 : index
    %0 = vector.load %arg1[%c0, %c0_0] : memref<2x128xf32, #tpu.memory_space<vmem>>, vector<1x128xf32>
    %c1 = arith.constant 1 : index
    %c0_1 = arith.constant 0 : index
    %1 = vector.load %arg1[%c1, %c0_1] : memref<2x128xf32, #tpu.memory_space<vmem>>, vector<1x128xf32>
    %c8_i32 = arith.constant 8 : i32
    %2 = arith.muli %arg0, %c8_i32 : i32
    %3 = tpu.iota {dimensions = array<i32: 0>} : vector<8x1xi32>
    %4 = arith.sitofp %3 : vector<8x1xi32> to vector<8x1xf32>
    %5 = arith.sitofp %2 : i32 to f32
    %6 = vector.broadcast %5 : f32 to vector<8x1xf32>
    %7 = arith.addf %4, %6 : vector<8x1xf32>
    %cst = arith.constant 4.000000e+00 : f32
    %8 = vector.broadcast %cst : f32 to vector<8x1xf32>
    %9 = arith.mulf %7, %8 : vector<8x1xf32>
    %10 = vector.broadcast %9 : vector<8x1xf32> to vector<8x128xf32>
    %11 = vector.broadcast %0 : vector<1x128xf32> to vector<8x128xf32>
    %12 = arith.mulf %10, %11 : vector<8x128xf32>
    %13 = vector.broadcast %1 : vector<1x128xf32> to vector<8x128xf32>
    %14 = arith.addf %12, %13 : vector<8x128xf32>
    %15 = math.sin %14 : vector<8x128xf32>
    %16 = vector.shape_cast %15 : vector<8x128xf32> to vector<1x8x128xf32>
    %cst_2 = arith.constant 1.57079637 : f32
    %17 = vector.broadcast %cst_2 : f32 to vector<8x128xf32>
    %18 = arith.addf %14, %17 : vector<8x128xf32>
    %19 = math.sin %18 : vector<8x128xf32>
    %20 = vector.shape_cast %19 : vector<8x128xf32> to vector<1x8x128xf32>
    %c0_3 = arith.constant 0 : index
    %c0_4 = arith.constant 0 : index
    %c0_5 = arith.constant 0 : index
    %21 = vector.load %arg2[%c0_3, %c0_4, %c0_5] : memref<1x1x128xf32, #tpu.memory_space<vmem>>, vector<1x1x128xf32>
    %c0_6 = arith.constant 0 : index
    %c0_7 = arith.constant 0 : index
    %c0_8 = arith.constant 0 : index
    %22 = vector.load %arg3[%c0_6, %c0_7, %c0_8] : memref<1x1x128xf32, #tpu.memory_space<vmem>>, vector<1x1x128xf32>
    %23 = vector.broadcast %21 : vector<1x1x128xf32> to vector<1x8x128xf32>
    %24 = arith.mulf %16, %23 : vector<1x8x128xf32>
    %25 = vector.broadcast %22 : vector<1x1x128xf32> to vector<1x8x128xf32>
    %26 = arith.mulf %20, %25 : vector<1x8x128xf32>
    %27 = arith.addf %24, %26 : vector<1x8x128xf32>
    %c0_9 = arith.constant 0 : index
    %c0_10 = arith.constant 0 : index
    %c0_11 = arith.constant 0 : index
    %28 = vector.load %arg4[%c0_9, %c0_10, %c0_11] : memref<1x8x128xf32, #tpu.memory_space<vmem>>, vector<1x8x128xf32>
    tpu.vector_store %arg4[%c0_9, %c0_10, %c0_11], %27 {strides = array<i32>} : memref<1x8x128xf32, #tpu.memory_space<vmem>>, vector<1x8x128xf32>,
    return
  }
  func.func @transform_0(%arg0: i32) -> (i32, i32) {
    %c0_i32 = arith.constant 0 : i32
    %c0_i32_0 = arith.constant 0 : i32
    %c0_i32_1 = arith.constant 0 : i32
    return %c0_i32, %c0_i32_0 : i32, i32
  }
  func.func @transform_1(%arg0: i32) -> (i32, i32, i32) {
    %c0_i32 = arith.constant 0 : i32
    %c0_i32_0 = arith.constant 0 : i32
    %c0_i32_1 = arith.constant 0 : i32
    %c0_i32_2 = arith.constant 0 : i32
    return %c0_i32, %c0_i32_0, %c0_i32_1 : i32, i32, i32
  }
  func.func @transform_2(%arg0: i32) -> (i32, i32, i32) {
    %c0_i32 = arith.constant 0 : i32
    %c0_i32_0 = arith.constant 0 : i32
    %c0_i32_1 = arith.constant 0 : i32
    %c0_i32_2 = arith.constant 0 : i32
    return %c0_i32, %c0_i32_0, %c0_i32_1 : i32, i32, i32
  }
  func.func @transform_3(%arg0: i32) -> (i32, i32, i32) {
    %c0_i32 = arith.constant 0 : i32
    %c0_i32_0 = arith.constant 0 : i32
    %c0_i32_1 = arith.constant 0 : i32
    return %arg0, %c0_i32, %c0_i32_0 : i32, i32, i32
  }
}

</mosaic_0001>

<bundles_post_ra>
// kernel: tpu_custom_call.1
= control target key start
LH: loop header
LB: loop body
LE: loop exit
PB: predicated region body
PF: predicated region fallthrough
CT: control target
= control target key end

     0   :  { %8 = vsyncpa [#allocation3], 0  ;;  %s490_s0 = inlined_call_operand.hbm [shape: f32[2,128], index: 0, kind: input, shape index: {}]   ;;  %s491_s1 = inlined_call_operand.vmem [shape: f32[1,1,128], index: 1, kind: input, shape index: {}]   ;;  %s492_s2 = inlined_call_operand.vmem [shape: f32[1,1,128], index: 2, kind: input, shape index: {}]   ;;  %s493_s3 = inlined_call_operand.hbm [shape: f32[1,8,128], index: 3, kind: output, shape index: {}]  }
   0x1   :  { %9 = vsyncpa [#allocation4], 0  ;;  %s369_s12 = smov [#allocation2]  }
   0x2   :  { %s16_s13 = sshll.u32 %s369_s12, 4  ;;  %s17_s13 = int_to_ptr.vmem [resolvable:$true] %s16_s13 }
   0x3   :  { %s333_s14 = scalar_lea.vmem %s17_s13, 32  ;;  %p338_p1 = scmp.lt.s32.totalorder %s17_s13, %s17_s13 }
   0x4   :  { %p334_p0 = scmp.ne.s32.totalorder %s17_s13, %s333_s14  ;;  %p339_p2 = scmp.lt.s32.totalorder %s333_s14, %s333_s14 }
   0x6   :  { %p340_p3 = por %p339_p2, %p338_p1 }
   0x8   :  { %p341_p4 = pnand %p340_p3, %p334_p0 }
   0xa   :  { %344 = shalt.err (!%p341_p4)
}
   0xb   :  { %19 = dma.hbm_to_vmem [thread:$0]  %s490_s0, 32, %s17_s13, [#allocation3]  }
   0xc   :  { %365 = dma.done.wait [#allocation3], 32  }
   0xd   :  { %366 = vsyncadd [#allocation3], 4294967264  ;;  %v30_v0 = vlaneseq  ;;  %v289_v4 = vld [vmem:[#allocation2] ss:$0 sm:$0xff]  ;;  %v290_v5 = vld [vmem:[#allocation2 + $0x1] ss:$0 sm:$0xff] }
   0xe   :  { %v370_v28 = vmov 683565275   ;;  %v371_v30 = vmov 2475754826   ;;  %v372_v32 = vmov 2131351028  }
   0xf   :  { %v31_v1 = vshrl.u32 %v30_v0, 7  ;;  %v373_v34 = vmov 2102212464   ;;  %v374_v36 = vmov 920167782   ;;  %s376_s20 = smov [#allocation5]  }
  0x10   :  { %v375_v43 = vmov 1326507024   ;;  %s280_s21 = sshll.u32 %s376_s20, 4  ;;  %s281_s21 = int_to_ptr.vmem [resolvable:$true] %s280_s21 }
  0x11   :  { %v32_v2 = vcvt.s32.f32 %v31_v1  ;;  %s345_s22 = scalar_lea.vmem %s281_s21, 128  ;;  %p350_p6 = scmp.lt.s32.totalorder %s281_s21, %s281_s21 }
  0x12   :  { %p346_p5 = scmp.ne.s32.totalorder %s281_s21, %s345_s22  ;;  %p351_p7 = scmp.lt.s32.totalorder %s345_s22, %s345_s22 }
  0x13   :  { %v36_v3 = vmul.f32 4.0, %v32_v2 }
  0x14   :  { %p352_p8 = por %p351_p7, %p350_p6 }
  0x15   :  { %v41_v6 = vmul.f32 %v289_v4, %v36_v3 }
  0x16   :  { %p353_p9 = pnand %p352_p8, %p346_p5 }
  0x17   :  { %v400_v7 = vadd.f32 %v290_v5, %v41_v6 }
  0x19   :  { %v47_v8 = vand.u32 2147483647, %v400_v7  ;;  %v50_v9 = vand.u32 2139095040, %v400_v7  ;;  %v405_v10 = vadd.f32 1.5707964, %v400_v7  ;;  %vm49_vm14 = vcmp.lt.s32.totalorder %v400_v7, 0 }
  0x1b   :  { %v51_v11 = vshrl.u32 %v50_v9, 23  ;;  %v54_v12 = vand.u32 8388607, %v47_v8  ;;  %v152_v13 = vand.u32 2147483647, %v405_v10  ;;  %v155_v14 = vand.u32 2139095040, %v405_v10 }
  0x1c   :  { %vm462_vm15 = vcmp.le.f32.partialorder %v47_v8, 0.7853982 }
  0x1d   :  { %v291_v15 = vadd.s32 4294967169, %v51_v11  ;;  %v156_v16 = vshrl.u32 %v155_v14, 23  ;;  %v55_v18 = vor.u32 8388608, %v54_v12  ;;  %v413_v20 = vand.u32 8388607, %v152_v13 }
  0x1f   :  { %v57_v17 = vadd.s32 1, %v291_v15  ;;  %v295_v19 = vadd.s32 4294967169, %v156_v16  ;;  %v415_v25 = vshll.u32 %v55_v18, 8  ;;  %v160_v26 = vor.u32 8388608, %v413_v20 }
  0x21   :  { %vm58_vm0 = vcmp.gt.s32.totalorder %v57_v17, 0  ;;  %v162_v22 = vadd.s32 1, %v295_v19 }
  0x22   :  { %v59_v21 = vsel %vm58_vm0, %v57_v17, 0  ;;  %vm154_vm0 = vcmp.lt.s32.totalorder %v405_v10, 0 }
  0x23   :  { %v60_v23 = vshrl.u32 %v59_v21, 5  ;;  %v61_v24 = vand.u32 31, %v59_v21  ;;  %vm163_vm1 = vcmp.gt.s32.totalorder %v162_v22, 0 }
  0x24   :  { %v164_v48 = vsel %vm163_vm1, %v162_v22, 0  ;;  %vm153_vm1 = vcmp.le.f32.partialorder %v152_v13, 0.7853982 }
  0x25   :  { %v62_v27 = vsub.s32 32, %v61_v24  ;;  %v64_v29 = vshll.u32 %v370_v28, %v61_v24  ;;  %v67_v31 = vshll.u32 %v371_v30, %v61_v24  ;;  %v70_v33 = vshll.u32 %v372_v32, %v61_v24 }
  0x26   :  { %v73_v35 = vshll.u32 %v373_v34, %v61_v24  ;;  %v76_v37 = vshll.u32 %v374_v36, %v61_v24  ;;  %vm79_vm2 = vcmp.lt.s32.totalorder %v60_v23, 1  ;;  %vm80_vm3 = vcmp.lt.s32.totalorder %v60_v23, 2 }
  0x27   :  { %v63_v38 = vshrl.u32 %v370_v28, %v62_v27  ;;  %v65_v39 = vshrl.u32 %v371_v30, %v62_v27  ;;  %v68_v40 = vshrl.u32 %v372_v32, %v62_v27  ;;  %v71_v41 = vshrl.u32 %v373_v34, %v62_v27 }
  0x28   :  { %v74_v42 = vshrl.u32 %v374_v36, %v62_v27  ;;  %v77_v44 = vshrl.u32 %v375_v43, %v62_v27  ;;  %vm81_vm4 = vcmp.lt.s32.totalorder %v60_v23, 3  ;;  %vm82_vm5 = vcmp.lt.s32.totalorder %v60_v23, 4 }
  0x29   :  { %v66_v45 = vor.u32 %v65_v39, %v64_v29  ;;  %v69_v46 = vor.u32 %v68_v40, %v67_v31  ;;  %v72_v47 = vor.u32 %v71_v41, %v70_v33  ;;  %v165_v51 = vshrl.u32 %v164_v48, 5 }
  0x2a   :  { %v75_v49 = vor.u32 %v74_v42, %v73_v35  ;;  %v78_v50 = vor.u32 %v77_v44, %v76_v37  ;;  %v166_v52 = vand.u32 31, %v164_v48 }
  0x2b   :  { %v83_v53 = vsel %vm79_vm2, %v63_v38, %v66_v45  ;;  %v84_v54 = vsel %vm82_vm5, %v72_v47, 2102212464  ;;  %v87_v55 = vsel %vm79_vm2, %v66_v45, %v69_v46  ;;  %v91_v56 = vsel %vm79_vm2, %v69_v46, %v72_v47 }
  0x2c   :  { %v85_v57 = vsel %vm81_vm4, %v69_v46, %v84_v54  ;;  %v88_v58 = vsel %vm82_vm5, %v75_v49, 920167782  ;;  %v92_v59 = vsel %vm82_vm5, %v78_v50, 1326507024  ;;  %v167_v60 = vsub.s32 32, %v166_v52 }
  0x2d   :  { %v86_v61 = vsel %vm80_vm3, %v83_v53, %v85_v57  ;;  %v89_v62 = vsel %vm81_vm4, %v72_v47, %v88_v58  ;;  %v93_v63 = vsel %vm81_vm4, %v75_v49, %v92_v59  ;;  %v169_v0 = vshll.u32 %v370_v28, %v166_v52 }
  0x2e   :  { %v90_v1 = vsel %vm80_vm3, %v87_v55, %v89_v62  ;;  %v94_v2 = vsel %vm80_vm3, %v91_v56, %v93_v63  ;;  %v102_v3 = vmul.u32 %v415_v25, %v86_v61  ;;  %v168_v4 = vshrl.u32 %v370_v28, %v167_v60 }
  0x2f   :  { %v430_v5 = vmul.u32.u64.low %v415_v25, %v94_v2  ;;  %v431_v6 = vmul.u32.u64.high %v415_v25, %v94_v2, %v430_v5  ;;  %v434_v9 = vmul.u32.u64.low %v415_v25, %v90_v1  ;;  %v435_v11 = vmul.u32.u64.high %v415_v25, %v90_v1, %v434_v9 }
  0x30   :  { %v170_v12 = vshrl.u32 %v371_v30, %v167_v60  ;;  %v172_v14 = vshll.u32 %v371_v30, %v166_v52  ;;  %v173_v15 = vshrl.u32 %v372_v32, %v167_v60  ;;  %v175_v16 = vshll.u32 %v372_v32, %v166_v52 }
  0x31   :  { %v176_v17 = vshrl.u32 %v373_v34, %v167_v60  ;;  %v178_v18 = vshll.u32 %v373_v34, %v166_v52  ;;  %v179_v19 = vshrl.u32 %v374_v36, %v167_v60  ;;  %v181_v21 = vshll.u32 %v374_v36, %v166_v52 }
  0x32   :  { %v171_v22 = vor.u32 %v170_v12, %v169_v0  ;;  %v174_v23 = vor.u32 %v173_v15, %v172_v14  ;;  %v182_v24 = vshrl.u32 %v375_v43, %v167_v60  ;;  %vm184_vm6 = vcmp.lt.s32.totalorder %v165_v51, 1 }
  0x33   :  { %vm104_vm7 = vc.u32 %v431_v6, %v434_v9  ;;  %v105_v27 = vadd.s32 1, %v435_v11  ;;  %v177_v28 = vor.u32 %v176_v17, %v175_v16  ;;  %v200_v25 = vshll.u32 %v160_v26, 8 }
  0x34   :  { %v180_v29 = vor.u32 %v179_v19, %v178_v18  ;;  %v183_v30 = vor.u32 %v182_v24, %v181_v21  ;;  %vm185_vm8 = vcmp.lt.s32.totalorder %v165_v51, 2  ;;  %vm186_vm9 = vcmp.lt.s32.totalorder %v165_v51, 3 }
  0x35   :  { %v106_v31 = vsel %vm104_vm7, %v105_v27, %v435_v11  ;;  %vm187_vm10 = vcmp.lt.s32.totalorder %v165_v51, 4  ;;  %v188_v32 = vsel %vm184_vm6, %v168_v4, %v171_v22  ;;  %v192_v33 = vsel %vm184_vm6, %v171_v22, %v174_v23 }
  0x36   :  { %v107_v34 = vadd.s32 %v106_v31, %v102_v3  ;;  %v189_v35 = vsel %vm187_vm10, %v177_v28, 2102212464  ;;  %v193_v36 = vsel %vm187_vm10, %v180_v29, 920167782  ;;  %v196_v37 = vsel %vm184_vm6, %v174_v23, %v177_v28 }
  0x37   :  { %v190_v38 = vsel %vm186_vm9, %v174_v23, %v189_v35  ;;  %v194_v39 = vsel %vm186_vm9, %v177_v28, %v193_v36  ;;  %v197_v20 = vsel %vm187_vm10, %v183_v30, 1326507024  ;;  %v103_v62 = vadd.s32 %v434_v9, %v431_v6 }
  0x38   :  { %v108_v26 = vadd.s32 536870912, %v107_v34  ;;  %v195_v40 = vsel %vm185_vm8, %v192_v33, %v194_v39  ;;  %v198_v41 = vsel %vm186_vm9, %v180_v29, %v197_v20  ;;  %v191_v42 = vsel %vm185_vm8, %v188_v32, %v190_v38 }
  0x39   :  { %v199_v43 = vsel %vm185_vm8, %v196_v37, %v198_v41  ;;  %v448_v44 = vmul.u32.u64.low %v200_v25, %v195_v40  ;;  %v449_v45 = vmul.u32.u64.high %v200_v25, %v195_v40, %v448_v44  ;;  %v207_v50 = vmul.u32 %v200_v25, %v191_v42 }
  0x3a   :  { %v109_v46 = vshrl.u32 %v108_v26, 30  ;;  %v451_v47 = vmul.u32.u64.low %v200_v25, %v199_v43  ;;  %v452_v48 = vmul.u32.u64.high %v200_v25, %v199_v43, %v451_v47  ;;  %vm139_vm5 = vweird.f32 %v400_v7 }
  0x3b   :  { %v210_v52 = vadd.s32 1, %v449_v45  ;;  %vm244_vm9 = vweird.f32 %v405_v10 }
  0x3c   :  { %v110_v49 = vshll.u32 %v109_v46, 30  ;;  %vm209_vm11 = vc.u32 %v452_v48, %v448_v44  ;;  %v208_v22 = vadd.s32 %v448_v44, %v452_v48  ;;  %v133_v32 = vsub.s32 4, %v109_v46 }
  0x3d   :  { %v211_v54 = vsel %vm209_vm11, %v210_v52, %v449_v45 }
  0x3e   :  { %v111_v53 = vsub.s32 %v107_v34, %v110_v49  ;;  %v212_v56 = vadd.s32 %v211_v54, %v207_v50  ;;  %v134_v37 = vsel %vm49_vm14, %v133_v32, %v109_v46 }
  0x3f   :  { %v136_v20 = vsel %vm462_vm15, 0, %v134_v37 }
  0x40   :  { %v113_v55 = vsub.s32 0, %v111_v53  ;;  %v213_v57 = vadd.s32 536870912, %v212_v56  ;;  %v140_v41 = vadd.s32 3, %v136_v20 }
  0x42   :  { %v292_v51 = vmin.u32 %v113_v55, %v111_v53  ;;  %v214_v59 = vshrl.u32 %v213_v57, 30  ;;  %v141_v46 = vand.u32 3, %v140_v41 }
  0x44   :  { %v115_v58 = vclz %v292_v51  ;;  %v215_v61 = vshll.u32 %v214_v59, 30  ;;  %v238_v26 = vsub.s32 4, %v214_v59  ;;  %vm143_vm2 = vcmp.eq.s32.totalorder %v141_v46, 0 }
  0x45   :  { %vm146_vm3 = vcmp.eq.s32.totalorder %v141_v46, 2  ;;  %vm142_vm4 = vcmp.lt.s32.totalorder %v141_v46, 2 }
  0x46   :  { %v293_v60 = vadd.s32 4294967294, %v115_v58  ;;  %v216_v0 = vsub.s32 %v212_v56, %v215_v61  ;;  %v239_v43 = vsel %vm154_vm0, %v238_v26, %v214_v59 }
  0x47   :  { %v241_v47 = vsel %vm153_vm1, 0, %v239_v43 }
  0x48   :  { %vm294_vm12 = vcmp.lt.s32.totalorder %v293_v60, 0  ;;  %v218_v4 = vsub.s32 0, %v216_v0  ;;  %v245_v52 = vadd.s32 3, %v241_v47 }
  0x49   :  { %v118_v63 = vsel %vm294_vm12, 0, %v293_v60  ;;  %v299_v60 = vld [vmem:[%s491_s1] ss:$0 sm:$0xff] }
  0x4a   :  { %v119_v1 = vsub.s32 32, %v118_v63  ;;  %v120_v2 = vshll.u32 %v111_v53, %v118_v63  ;;  %v123_v3 = vsub.s32 4294967266, %v118_v63  ;;  %v296_v12 = vmin.u32 %v218_v4, %v216_v0 }
  0x4b   :  { %v246_v54 = vand.u32 3, %v245_v52 }
  0x4c   :  { %v121_v5 = vshrl.u32 %v103_v62, %v119_v1  ;;  %v124_v11 = vadd.s32 127, %v123_v3  ;;  %v220_v16 = vclz %v296_v12 }
  0x4d   :  { %vm251_vm6 = vcmp.eq.s32.totalorder %v246_v54, 2  ;;  %vm248_vm7 = vcmp.eq.s32.totalorder %v246_v54, 0  ;;  %vm247_vm8 = vcmp.lt.s32.totalorder %v246_v54, 2 }
  0x4e   :  { %v122_v14 = vor.u32 %v121_v5, %v120_v2  ;;  %v125_v15 = vshll.u32 %v124_v11, 23  ;;  %v297_v19 = vadd.s32 4294967294, %v220_v16 }
  0x50   :  { %v126_v17 = vor.u32 4788187, %v125_v15  ;;  %v129_v18 = vcvt.s32.f32 %v122_v14  ;;  %vm298_vm13 = vcmp.lt.s32.totalorder %v297_v19, 0 }
  0x51   :  { %v223_v9 = vsel %vm298_vm13, 0, %v297_v19 }
  0x52   :  { %v127_v21 = vand.u32 2147483647, %v126_v17  ;;  %v224_v23 = vsub.s32 32, %v223_v9  ;;  %v225_v24 = vshll.u32 %v216_v0, %v223_v9  ;;  %v228_v27 = vsub.s32 4294967266, %v223_v9 }
  0x54   :  { %v130_v6 = vmul.f32 %v129_v18, %v127_v21  ;;  %v226_v29 = vshrl.u32 %v208_v22, %v224_v23  ;;  %v229_v30 = vadd.s32 127, %v228_v27 }
  0x56   :  { %v131_v25 = vxor.u32 2147483648, %v130_v6  ;;  %v227_v34 = vor.u32 %v226_v29, %v225_v24  ;;  %v230_v35 = vshll.u32 %v229_v30, 23 }
  0x58   :  { %v132_v31 = vsel %vm49_vm14, %v131_v25, %v130_v6  ;;  %v231_v36 = vor.u32 4788187, %v230_v35  ;;  %v234_v8 = vcvt.s32.f32 %v227_v34 }
  0x59   :  { %v135_v33 = vsel %vm462_vm15, %v400_v7, %v132_v31  ;;  %v300_v7 = vld [vmem:[%s492_s2] ss:$0 sm:$0xff] }
  0x5a   :  { %317 = vcosq.f32 %v135_v33  ;;  %v232_v38 = vand.u32 2147483647, %v231_v36 }
  0x5b   :  { %319 = vsinq.f32 %v135_v33 }
  0x5c   :  { %v235_v39 = vmul.f32 %v234_v8, %v232_v38 }
  0x5e   :  { %v236_v40 = vxor.u32 2147483648, %v235_v39 }
  0x60   :  { %v237_v42 = vsel %vm154_vm0, %v236_v40, %v235_v39 }
  0x61   :  { %v240_v44 = vsel %vm153_vm1, %v405_v10, %v237_v42 }
  0x62   :  { %321 = vcosq.f32 %v240_v44 }
  0x63   :  { %323 = vsinq.f32 %v240_v44 }
  0x67   :  { %v318_v45 = vpop.eup %317 }
  0x68   :  { %v320_v48 = vpop.eup %319  ;;  %v147_v50 = vxor.u32 2147483648, %v318_v45 }
  0x69   :  { %v144_v49 = vxor.u32 2147483648, %v320_v48 }
  0x6a   :  { %v148_v13 = vsel %vm146_vm3, %v147_v50, %v320_v48 }
  0x6b   :  { %v145_v53 = vsel %vm143_vm2, %v318_v45, %v144_v49 }
  0x6c   :  { %v149_v55 = vsel %vm142_vm4, %v145_v53, %v148_v13 }
  0x6d   :  { %v150_v58 = vsel %vm139_vm5, nan, %v149_v55 }
  0x6e   :  { %v264_v0 = vmul.f32 %v299_v60, %v150_v58 }
  0x6f   :  { %v322_v56 = vpop.eup %321 }
  0x70   :  { %v324_v51 = vpop.eup %323  ;;  %v252_v57 = vxor.u32 2147483648, %v322_v56 }
  0x71   :  { %v249_v59 = vxor.u32 2147483648, %v324_v51 }
  0x72   :  { %v253_v61 = vsel %vm251_vm6, %v252_v57, %v324_v51 }
  0x73   :  { %v250_v62 = vsel %vm248_vm7, %v322_v56, %v249_v59 }
  0x74   :  { %v254_v63 = vsel %vm247_vm8, %v250_v62, %v253_v61 }
  0x75   :  { %v255_v1 = vsel %vm244_vm9, nan, %v254_v63 }
  0x76   :  { %v271_v2 = vmul.f32 %v300_v7, %v255_v1 }
  0x78   :  { %v272_v3 = vadd.f32 %v271_v2, %v264_v0 }
  0x7a   :  { %273 = vst [vmem:[#allocation5] sm:$0xff] %v272_v3 }
  0x7b   :  { %356 = shalt.err (!%p353_p9)
}
  0x7c   :  { %283 = dma.vmem_to_hbm [thread:$0]  %s281_s21, 128, %s493_s3, [#allocation4]  }
  0x7d   :  { %367 = dma.done.wait [#allocation4], 128  }
  0x7e   :  { %368 = vsyncadd [#allocation4], 4294967168 }
  0x7f   :  { %287 = vsyncpa [#allocation3], 1 }
  0x80   :  { %288 = vsyncpa [#allocation4], 1 }

</bundles_post_ra>
